<compile_context>
chip_gen: v7x
topology: tpu7x:2x2x1
jax: 0.10.0
libtpu: 0.0.40
codegen_flags: <defaults>
</compile_context>

<pallas_src>
import functools

import jax
import jax.numpy as jnp
from jax.experimental import pallas as pl
from jax.experimental.pallas import tpu as pltpu

FILLUP_POLARITY_VALUE = -100


def _ce_lsr_kernel(pred_ref, labels_ref, out_ref, *, smoothing, num_classes,
                   seq_len, tile_t, ragged):
    # pred_ref:   (C, tile_t) native dtype (bf16/f32), class axis on sublanes
    # labels_ref: (1, tile_t) int8
    # out_ref:    (1, 128) f32 accumulator block (same block for every target tile of
    #             this batch row -> stays VMEM-resident across the "arbitrary" axis)
    C = num_classes
    L = tile_t

    x = pred_ref[...].astype(jnp.float32)               # (C, L)
    lab = labels_ref[...].astype(jnp.int32)              # (1, L)

    # fill-up (padding) targets contribute exactly zero loss
    valid = lab != FILLUP_POLARITY_VALUE                  # (1, L) bool

    if ragged:
        # Last target tile extends past T: mask by absolute column index and zero the
        # out-of-bounds prediction lanes so stale VMEM bits (possibly NaN/Inf) never
        # reach exp/log.  (Do NOT rely on out-of-bounds labels being -100.)
        t = pl.program_id(1)
        col = jax.lax.broadcasted_iota(jnp.int32, (1, L), 1) + t * tile_t
        in_bounds = col < seq_len                           # (1, L)
        valid = jnp.logical_and(valid, in_bounds)
        x = jnp.where(in_bounds, x, 0.0)

    # --- numerically stable log-softmax pieces over the (small) class/sublane axis ---
    m = jnp.max(x, axis=0, keepdims=True)                  # (1, L)
    shifted = x - m                                         # (C, L)
    lse = jnp.log(jnp.sum(jnp.exp(shifted), axis=0, keepdims=True))  # (1, L)

    # --- closed-form label-smoothed CE (no materialized one-hot) ---
    #   sum_c logp   = sum_c shifted - C * lse
    #   logp[label]  = shifted[label] - lse
    class_idx = jax.lax.broadcasted_iota(jnp.int32, (C, L), 0)        # (C, L)
    shifted_at_label = jnp.sum(
        jnp.where(class_idx == lab, shifted, 0.0), axis=0, keepdims=True
    )                                                       # (1, L)
    logp_at_label = shifted_at_label - lse
    sum_logp = jnp.sum(shifted, axis=0, keepdims=True) - float(C) * lse

    base_prob = smoothing / float(C)
    per_target = -(base_prob * sum_logp + (1.0 - smoothing) * logp_at_label)
    per_target = jnp.where(valid, per_target, 0.0)          # (1, L)

    # per-tile partial (lane reduce, keepdims keeps everything 2-D)
    partial = jnp.sum(per_target, axis=1, keepdims=True)    # (1, 1)

    @pl.when(pl.program_id(1) == 0)
    def _init():
        out_ref[...] = jnp.zeros_like(out_ref)

    # all 128 lanes of the accumulator receive the same value; wrapper reads lane 0
    out_ref[...] = out_ref[...] + partial


def cross_entropy_lsr(predictions, labels, smoothing_value=0.2, size_average=True,
                      max_tile_t=64 * 1024):
    """predictions: (B, C, T) float (any dtype); labels: (B, T) int. Returns scalar loss.

    Matches the PyTorch module: per-batch loss = sum over classes & targets of
    -smooth_one_hot * log_softmax(pred, dim=1); `size_average=True` averages the
    per-batch sums over the batch size (== total / B).
    """
    B, C, T = predictions.shape
    assert labels.shape == (B, T)
    assert max_tile_t % 128 == 0, "max_tile_t must be a multiple of 128"

    # Labels: int8 is plenty for {-100, 0..C-1}; 4x less HBM label traffic.
    # (Ideally the data pipeline already provides int8 so this cast fuses away.)
    label_dtype = jnp.int8 if C <= 127 else jnp.int32
    labs = labels
    if labs.dtype != label_dtype:
        labs = labs.astype(label_dtype)
    labs = labs.reshape(B, 1, T)          # free (metadata-only) reshape

    # Tile the target axis: full-T block when it fits (no 128-divisibility needed when
    # the block equals the array dim), otherwise a large multiple-of-128 tile.
    if T <= max_tile_t:
        tile_t = T
        num_t = 1
    else:
        tile_t = max_tile_t
        num_t = pl.cdiv(T, tile_t)
    ragged = (num_t * tile_t) != T

    kernel = functools.partial(
        _ce_lsr_kernel,
        smoothing=float(smoothing_value),
        num_classes=C,
        seq_len=T,
        tile_t=tile_t,
        ragged=ragged,
    )

    partials = pl.pallas_call(
        kernel,
        grid=(B, num_t),
        out_shape=jax.ShapeDtypeStruct((B, 1, 128), jnp.float32),
        in_specs=[
            # native (B, C, T) layout: batch squeezed, class on sublanes, targets on lanes
            pl.BlockSpec((None, C, tile_t), lambda b, t: (b, 0, t)),
            pl.BlockSpec((None, 1, tile_t), lambda b, t: (b, 0, t)),
        ],
        # same out block for every target tile of a batch row -> VMEM-resident accumulator
        out_specs=pl.BlockSpec((None, 1, 128), lambda b, t: (b, 0, 0)),
        compiler_params=pltpu.CompilerParams(
            dimension_semantics=("parallel", "arbitrary"),
            vmem_limit_bytes=32 * 1024 * 1024,
        ),
    )(predictions, labs)

    per_batch = partials[:, 0, 0]          # (B,) — every lane holds the same sum
    total = jnp.sum(per_batch)
    if size_average:
        # module semantics: mean over the batch dimension of per-batch sums (= total / B)
        return total / float(B)
    return total


def _reference(predictions, labels, smoothing_value=0.2, size_average=True):
    """Pure-JAX reference mirroring the PyTorch module."""
    B, C, T = predictions.shape
    logp = jax.nn.log_softmax(predictions.astype(jnp.float32), axis=1)
    base_prob = smoothing_value / C
    labels_b = labels[:, None, :]
    class_idx = jax.lax.broadcasted_iota(jnp.int32, (B, C, T), 1)
    one_hot = base_prob + jnp.where(class_idx == labels_b, 1.0 - smoothing_value, 0.0)
    mask = (labels_b != FILLUP_POLARITY_VALUE).astype(jnp.float32)
    loss = jnp.sum(-one_hot * mask * logp, axis=(1, 2))
    return jnp.mean(loss) if size_average else jnp.sum(loss)


if __name__ == "__main__":
    key = jax.random.PRNGKey(0)
    k1, k2, k3, k4, k5, k6 = jax.random.split(key, 6)

    # Case 1: shapes from the module docstring (batch=2, polarities=3, targets=5), f32.
    B, C, T = 2, 3, 5
    pred1 = jax.random.normal(k1, (B, C, T), dtype=jnp.float32)
    lab1 = jax.random.randint(k2, (B, T), 0, C, dtype=jnp.int32)
    lab1 = lab1.at[1, 4].set(FILLUP_POLARITY_VALUE)   # exercise the fill-up mask

    out1_mean = cross_entropy_lsr(pred1, lab1, 0.2, True)
    out1_sum = cross_entropy_lsr(pred1, lab1, 0.2, False)
    ref1_mean = _reference(pred1, lab1, 0.2, True)
    ref1_sum = _reference(pred1, lab1, 0.2, False)

    # Case 2: larger batch*targets, bf16 predictions (native-dtype DMA path).
    B2, C2, T2 = 8, 3, 160
    pred2 = jax.random.normal(k3, (B2, C2, T2), dtype=jnp.float32).astype(jnp.bfloat16)
    lab2 = jax.random.randint(k4, (B2, T2), 0, C2, dtype=jnp.int32)
    lab2 = lab2.at[0, :7].set(FILLUP_POLARITY_VALUE)

    out2_mean = cross_entropy_lsr(pred2, lab2, 0.2, True)
    out2_sum = cross_entropy_lsr(pred2, lab2, 0.2, False)
    ref2_mean = _reference(pred2, lab2, 0.2, True)
    ref2_sum = _reference(pred2, lab2, 0.2, False)

    # Case 3: multi-tile target axis with a ragged tail (600 = 2*256 + 88):
    # exercises the cross-tile accumulator and the in-kernel tail mask.
    B3, C3, T3 = 2, 3, 600
    pred3 = jax.random.normal(k5, (B3, C3, T3), dtype=jnp.float32)
    lab3 = jax.random.randint(k6, (B3, T3), 0, C3, dtype=jnp.int32)
    lab3 = lab3.at[1, 100:130].set(FILLUP_POLARITY_VALUE)

    out3_mean = cross_entropy_lsr(pred3, lab3, 0.2, True, max_tile_t=256)
    out3_sum = cross_entropy_lsr(pred3, lab3, 0.2, False, max_tile_t=256)
    ref3_mean = _reference(pred3, lab3, 0.2, True)
    ref3_sum = _reference(pred3, lab3, 0.2, False)

    jax.block_until_ready((out1_mean, out1_sum, out2_mean, out2_sum,
                           out3_mean, out3_sum))

    assert jnp.allclose(out1_mean, ref1_mean, rtol=1e-5, atol=1e-4), (out1_mean, ref1_mean)
    assert jnp.allclose(out1_sum, ref1_sum, rtol=1e-5, atol=1e-4), (out1_sum, ref1_sum)
    assert jnp.allclose(out2_mean, ref2_mean, rtol=1e-4, atol=1e-3), (out2_mean, ref2_mean)
    assert jnp.allclose(out2_sum, ref2_sum, rtol=1e-4, atol=1e-3), (out2_sum, ref2_sum)
    assert jnp.allclose(out3_mean, ref3_mean, rtol=1e-5, atol=1e-3), (out3_mean, ref3_mean)
    assert jnp.allclose(out3_sum, ref3_sum, rtol=1e-5, atol=1e-3), (out3_sum, ref3_sum)

    print("KERNEL_OK")
</pallas_src>

<mosaic_0001>
module attributes {stable_mosaic.version = 11 : i64} {
  func.func @_ce_lsr_kernel(%arg0: i32, %arg1: i32, %arg2: memref<1x3x5xf32, #tpu.memory_space<vmem>>, %arg3: memref<1x1x5xi8, #tpu.memory_space<vmem>>, %arg4: memref<1x1x128xf32, #tpu.memory_space<vmem>>) attributes {dimension_semantics = [#tpu.dimension_semantics<parallel>, #tpu.dimension_semantics<arbitrary>], iteration_bounds = array<i64: 2, 1>, scalar_prefetch = 0 : i64, scratch_operands = 0 : i64, tpu.core_type = #tpu.core_type<tc>, window_params = [{transform_indices = @transform_0, window_bounds = array<i64: 1, 3, 5>}, {transform_indices = @transform_1, window_bounds = array<i64: 1, 1, 5>}, {transform_indices = @transform_2, window_bounds = array<i64: 1, 1, 128>}]} {
    %c0 = arith.constant 0 : index
    %c0_0 = arith.constant 0 : index
    %c0_1 = arith.constant 0 : index
    %0 = vector.load %arg2[%c0, %c0_0, %c0_1] : memref<1x3x5xf32, #tpu.memory_space<vmem>>, vector<1x3x5xf32>
    %1 = vector.shape_cast %0 : vector<1x3x5xf32> to vector<3x5xf32>
    %c0_2 = arith.constant 0 : index
    %c0_3 = arith.constant 0 : index
    %c0_4 = arith.constant 0 : index
    %2 = vector.load %arg3[%c0_2, %c0_3, %c0_4] : memref<1x1x5xi8, #tpu.memory_space<vmem>>, vector<1x1x5xi8>
    %3 = vector.shape_cast %2 : vector<1x1x5xi8> to vector<1x5xi8>
    %4 = arith.extsi %3 : vector<1x5xi8> to vector<1x5xi32>
    %c-100_i32 = arith.constant -100 : i32
    %5 = vector.broadcast %c-100_i32 : i32 to vector<1x5xi32>
    %6 = arith.cmpi ne, %4, %5 : vector<1x5xi32>
    %cst = arith.constant dense<0xFF800000> : vector<5xf32>
    %7 = vector.multi_reduction <maximumf>, %1, %cst [0] : vector<3x5xf32> to vector<5xf32>
    %8 = vector.shape_cast %7 : vector<5xf32> to vector<1x5xf32>
    %9 = vector.broadcast %8 : vector<1x5xf32> to vector<3x5xf32>
    %10 = arith.subf %1, %9 : vector<3x5xf32>
    %11 = math.exp %10 : vector<3x5xf32>
    %cst_5 = arith.constant dense<0.000000e+00> : vector<5xf32>
    %12 = vector.multi_reduction <add>, %11, %cst_5 [0] : vector<3x5xf32> to vector<5xf32>
    %13 = vector.shape_cast %12 : vector<5xf32> to vector<1x5xf32>
    %14 = math.log %13 : vector<1x5xf32>
    %15 = tpu.iota {dimensions = array<i32: 0>} : vector<3x5xi32>
    %16 = vector.broadcast %4 : vector<1x5xi32> to vector<3x5xi32>
    %17 = arith.cmpi eq, %15, %16 : vector<3x5xi32>
    %cst_6 = arith.constant 0.000000e+00 : f32
    %18 = vector.broadcast %cst_6 : f32 to vector<3x5xf32>
    %19 = arith.select %17, %10, %18 : vector<3x5xi1>, vector<3x5xf32>
    %cst_7 = arith.constant dense<0.000000e+00> : vector<5xf32>
    %20 = vector.multi_reduction <add>, %19, %cst_7 [0] : vector<3x5xf32> to vector<5xf32>
    %21 = vector.shape_cast %20 : vector<5xf32> to vector<1x5xf32>
    %22 = arith.subf %21, %14 : vector<1x5xf32>
    %cst_8 = arith.constant dense<0.000000e+00> : vector<5xf32>
    %23 = vector.multi_reduction <add>, %10, %cst_8 [0] : vector<3x5xf32> to vector<5xf32>
    %24 = vector.shape_cast %23 : vector<5xf32> to vector<1x5xf32>
    %cst_9 = arith.constant 3.000000e+00 : f32
    %25 = vector.broadcast %cst_9 : f32 to vector<1x5xf32>
    %26 = arith.mulf %25, %14 : vector<1x5xf32>
    %27 = arith.subf %24, %26 : vector<1x5xf32>
    %cst_10 = arith.constant 0.0666666701 : f32
    %28 = vector.broadcast %cst_10 : f32 to vector<1x5xf32>
    %29 = arith.mulf %28, %27 : vector<1x5xf32>
    %cst_11 = arith.constant 8.000000e-01 : f32
    %30 = vector.broadcast %cst_11 : f32 to vector<1x5xf32>
    %31 = arith.mulf %30, %22 : vector<1x5xf32>
    %32 = arith.addf %29, %31 : vector<1x5xf32>
    %cst_12 = arith.constant 0.000000e+00 : f32
    %33 = vector.broadcast %cst_12 : f32 to vector<1x5xf32>
    %34 = arith.subf %33, %32 : vector<1x5xf32>
    %cst_13 = arith.constant 0.000000e+00 : f32
    %35 = vector.broadcast %cst_13 : f32 to vector<1x5xf32>
    %36 = arith.select %6, %34, %35 : vector<1x5xi1>, vector<1x5xf32>
    %cst_14 = arith.constant dense<0.000000e+00> : vector<1xf32>
    %37 = vector.multi_reduction <add>, %36, %cst_14 [1] : vector<1x5xf32> to vector<1xf32>
    %38 = vector.shape_cast %37 : vector<1xf32> to vector<1x1xf32>
    %c0_i32 = arith.constant 0 : i32
    %39 = arith.cmpi eq, %arg1, %c0_i32 : i32
    %40 = arith.extui %39 : i1 to i32
    %c0_i32_15 = arith.constant 0 : i32
    %41 = arith.cmpi ne, %40, %c0_i32_15 : i32
    scf.if %41 {
      %cst_22 = arith.constant 0.000000e+00 : f32
      %49 = vector.broadcast %cst_22 : f32 to vector<1x128xf32>
      %c0_23 = arith.constant 0 : index
      %c0_24 = arith.constant 0 : index
      %c0_25 = arith.constant 0 : index
      %50 = vector.load %arg4[%c0_23, %c0_24, %c0_25] : memref<1x1x128xf32, #tpu.memory_space<vmem>>, vector<1x1x128xf32>
      %51 = vector.shape_cast %50 : vector<1x1x128xf32> to vector<1x128xf32>
      %52 = vector.shape_cast %49 : vector<1x128xf32> to vector<1x1x128xf32>
      tpu.vector_store %arg4[%c0_23, %c0_24, %c0_25], %52 {strides = array<i32>} : memref<1x1x128xf32, #tpu.memory_space<vmem>>, vector<1x1x128xf32>,
    } else {
    }
    %c0_16 = arith.constant 0 : index
    %c0_17 = arith.constant 0 : index
    %c0_18 = arith.constant 0 : index
    %42 = vector.load %arg4[%c0_16, %c0_17, %c0_18] : memref<1x1x128xf32, #tpu.memory_space<vmem>>, vector<1x1x128xf32>
    %43 = vector.shape_cast %42 : vector<1x1x128xf32> to vector<1x128xf32>
    %44 = vector.broadcast %38 : vector<1x1xf32> to vector<1x128xf32>
    %45 = arith.addf %43, %44 : vector<1x128xf32>
    %c0_19 = arith.constant 0 : index
    %c0_20 = arith.constant 0 : index
    %c0_21 = arith.constant 0 : index
    %46 = vector.load %arg4[%c0_19, %c0_20, %c0_21] : memref<1x1x128xf32, #tpu.memory_space<vmem>>, vector<1x1x128xf32>
    %47 = vector.shape_cast %46 : vector<1x1x128xf32> to vector<1x128xf32>
    %48 = vector.shape_cast %45 : vector<1x128xf32> to vector<1x1x128xf32>
    tpu.vector_store %arg4[%c0_19, %c0_20, %c0_21], %48 {strides = array<i32>} : memref<1x1x128xf32, #tpu.memory_space<vmem>>, vector<1x1x128xf32>,
    return
  }
  func.func @transform_0(%arg0: i32, %arg1: i32) -> (i32, i32, i32) {
    %c0_i32 = arith.constant 0 : i32
    %c0_i32_0 = arith.constant 0 : i32
    return %arg0, %c0_i32, %arg1 : i32, i32, i32
  }
  func.func @transform_1(%arg0: i32, %arg1: i32) -> (i32, i32, i32) {
    %c0_i32 = arith.constant 0 : i32
    %c0_i32_0 = arith.constant 0 : i32
    return %arg0, %c0_i32, %arg1 : i32, i32, i32
  }
  func.func @transform_2(%arg0: i32, %arg1: i32) -> (i32, i32, i32) {
    %c0_i32 = arith.constant 0 : i32
    %c0_i32_0 = arith.constant 0 : i32
    %c0_i32_1 = arith.constant 0 : i32
    return %arg0, %c0_i32, %c0_i32_0 : i32, i32, i32
  }
}

</mosaic_0001>

<bundles_post_ra>
// kernel: tpu_custom_call.1
= control target key start
LH: loop header
LB: loop body
LE: loop exit
PB: predicated region body
PF: predicated region fallthrough
CT: control target
= control target key end

     0   :  { %7 = vsyncpa [#allocation3], 0  ;;  %s628_s0 = inlined_call_operand.vmem [shape: f32[2,3,5], index: 0, kind: input, shape index: {}]   ;;  %s629_s1 = inlined_call_operand.vmem [shape: s8[2,1,5], index: 1, kind: input, shape index: {}]   ;;  %s630_s2 = inlined_call_operand.hbm [shape: f32[2,1,128], index: 2, kind: output, shape index: {}]  }
   0x1   :  { %9 = vsyncpa [#allocation3 + $0x1], 0  ;;  %s509_s9 = smov 0   ;;  %s511_s10 = smov 0  }
   0x2   :  { %s513_s11 = smov 0   ;;  %s515_s12 = smov 0  }
   0x3   :  { %s517_s13 = smov 0   ;;  %s519_s14 = smov 0  }
   0x4 LB: > { %s343_s15 = sadd.s32 4294967295, %s490_s14   ;;  %s344_s16 = sadd.s32 4294967294, %s490_s14   ;;  %s490_s14 = sphi %s519_s14, %s15_s14   ;;  %s486_s13 = sphi %s517_s13, %s637_s13   ;;  %s482_s12 = sphi %s515_s12, %s636_s12   ;;  %s478_s11 = sphi %s513_s11, %s635_s11   ;;  %s474_s10 = sphi %s511_s10, %s634_s10   ;;  %s470_s9 = sphi %s509_s9, %s633_s9  }
   0x5   : > { %s27_s17 = sadd.s32 1, %s486_s13  ;;  %s90_s18 = sadd.s32 1, %s478_s11 }
   0x6   : > { %p29_p0 = scmp.ge.s32.totalorder %s27_s17, 2  ;;  %p100_p1 = scmp.ne.s32.totalorder %s478_s11, %s474_s10 }
   0x7   : > { %p101_p2 = scmp.eq.s32.totalorder %s343_s15, 1  ;;  %p106_p3 = scmp.ne.s32.totalorder %s474_s10, %s470_s9 }
   0x8   : > { %s639_s17 = smov (%p29_p0, %s27_s17), 0  ;;  %p107_p5 = scmp.eq.s32.totalorder %s344_s16, 1 }
   0x9   : > { %p549_p4 = por %p101_p2, %p100_p1  ;;  %s87_s20 = ssub.s32 %s486_s13, %s639_s17 }
   0xa   : > { %p347_p6 = scmp.ge.s32.totalorder %s490_s14, 1  ;;  %p88_p7 = scmp.eq.s32.totalorder %s87_s20, 0 }
   0xb   : > { %p556_p8 = por %p107_p5, %p106_p3  ;;  %p144_p9 = scmp.lt.s32.totalorder %s490_s14, 3 }
   0xc   : > { %s562_s22 = scalar_select %p88_p7, %s478_s11, %s90_s18  }
   0xd   : > { %p145_p10 = pnand %p347_p6, %p144_p9 }
   0xe   : > { %p173_p11 = scmp.lt.s32.totalorder (!%p145_p10), %s482_s12, 1  ;;  %vm190_vm0 = vcmask (!%p145_p10), 34816   ;;  %v210_v5 = vlaneseq (!%p145_p10)  ;;  %vm240_vm3 = vcmask (!%p145_p10), 32768   ;;  %s171_s3 = sand.u32 (!%p145_p10), 1, %s474_s10   ;;  %v492_v50 = vmov (!%p145_p10), 0.0  }
   0xf   : > { %148 = sbr.rel (%p145_p10) target bundleno = 251 (0xfb), region = 28  ;;  %s172_s4 = scalar_lea.vmem (!%p145_p10), [#allocation2], %s171_s3 }
  0x10   : > { %v211_v8 = vshrl.u32 (!%p145_p10), %v210_v5, 7  ;;  %248 = vst [vmem:[%s172_s4] sm:$0x1] (!%p145_p10), %v492_v50  ;;  %s349_s5 = sshll.u32 (!%p145_p10), %s482_s12, 4  ;;  %s265_s6 = sshll.u32 (!%p145_p10), %s172_s4, 4  ;;  %s583_s6 = int_to_ptr.vmem [resolvable:$true] %s265_s6 }
  0x11   : > { %s581_s15 = scalar_lea.hbm (!%p145_p10), %s630_s2, %s349_s5  ;;  %s253_s16 = scalar_lea.sflag (!%p145_p10), [#allocation3], %s171_s3 }
  0x12   : > { %v214_v13 = vsub.s32 (!%p145_p10), 0, %v211_v8  ;;  %s412_s18 = scalar_lea.vmem (!%p145_p10), %s583_s6, 16 }
  0x13   : > { %p413_p12 = scmp.ne.s32.totalorder (!%p145_p10), %s583_s6, %s412_s18 }
  0x15   : > { %p414_p13 = pnand (!%p145_p10), %p413_p12, %p549_p4 }
  0x16   : > { %s174_s23 = scalar_select %p173_p11, %s482_s12, 1 }
  0x17   : > { %v249_v51 = vld [vmem:[%s172_s4] sm:$0x1]  ;;  %p415_p0 = pneg %p414_p13  ;;  %s493_s12 = smov [#allocation2]  }
  0x18   : > { %s348_s24 = sshll.u32 %s174_s23, 2  ;;  %s185_s30 = scalar_lea.vmem %s629_s1, %s174_s23 }
  0x19   : > { %s179_s27 = scalar_lea.vmem %s628_s0, %s348_s24  ;;  %v187_v9 = vld [vmem:[%s185_s30] sm:$0x1]  ;;  %s416_s20 = sshll.u32 %s493_s12, 4  ;;  %s417_s20 = int_to_ptr.vmem [resolvable:$false] %s416_s20 }
  0x1a   : > { %v186_v0 = vld [vmem:[%s179_s27] sm:$0x7]  ;;  %v188_v11 = vunpack.c.0.s8 %v187_v9  ;;  %s418_s23 = scalar_lea.vmem %s417_s20, 32  ;;  %p419_p1 = scmp.lt.s32.totalorder %s583_s6, %s417_s20 }
  0x1b   : > { %v191_v1 = vsel %vm190_vm0, %v186_v0, -inf  ;;  %p420_p2 = scmp.lt.s32.totalorder %s418_s23, %s412_s18 }
  0x1c   : > { %v192_v2 = vrot.slane %v191_v1, 4  ;;  %v215_v15 = vrot.slane %v188_v11, %v214_v13  ;;  %vm189_vm2 = vcmp.ne.s32.totalorder %v188_v11, 4294967196 }
  0x1d   : > { %p421_p3 = por %p420_p2, %p419_p1 }
  0x1e   : > { %v193_v3 = vmax.f32 %v191_v1, %v192_v2  ;;  %vm216_vm1 = vcmp.eq.s32.totalorder %v211_v8, %v215_v15 }
  0x1f   : > { %p422_p5 = pnand %p421_p3, %p415_p0 }
  0x20   : > { %v194_v4 = vrot.slane %v193_v3, 2 }
  0x22   : > { %v195_v6 = vmax.f32 %v193_v3, %v194_v4 }
  0x24   : > { %v196_v7 = vrot.slane %v195_v6, 1 }
  0x26   : > { %v197_v10 = vmax.f32 %v195_v6, %v196_v7 }
  0x28   : > { %v198_v12 = vsub.f32 %v186_v0, %v197_v10 }
  0x2a   : > { %v199_v14 = vmul.f32 1.442695, %v198_v12  ;;  %v217_v16 = vsel %vm216_vm1, %v198_v12, 0.0  ;;  %v226_v21 = vsel %vm190_vm0, %v198_v12, 0.0 }
  0x2b   : > { %v218_v18 = vsel %vm190_vm0, %v217_v16, 0.0  ;;  %v227_v24 = vrot.slane %v226_v21, 4 }
  0x2c   : > { %408 = vpow2.f32 %v199_v14  ;;  %v219_v22 = vrot.slane %v218_v18, 4 }
  0x2d   : > { %v228_v28 = vadd.f32 %v227_v24, %v226_v21 }
  0x2e   : > { %v220_v26 = vadd.f32 %v219_v22, %v218_v18 }
  0x2f   : > { %v229_v32 = vrot.slane %v228_v28, 2 }
  0x30   : > { %v221_v30 = vrot.slane %v220_v26, 2 }
  0x31   : > { %v230_v34 = vadd.f32 %v229_v32, %v228_v28 }
  0x32   : > { %v222_v33 = vadd.f32 %v221_v30, %v220_v26 }
  0x33   : > { %v231_v36 = vrot.slane %v230_v34, 1 }
  0x34   : > { %v223_v35 = vrot.slane %v222_v33, 1 }
  0x35   : > { %v232_v40 = vadd.f32 %v231_v36, %v230_v34 }
  0x36   : > { %v409_v17 = vpop.eup %408  ;;  %v224_v37 = vadd.f32 %v223_v35, %v222_v33 }
  0x37   : > { %v201_v19 = vsel %vm190_vm0, %v409_v17, 0.0 }
  0x38   : > { %v202_v20 = vrot.slane %v201_v19, 4 }
  0x3a   : > { %v203_v23 = vadd.f32 %v202_v20, %v201_v19 }
  0x3c   : > { %v204_v25 = vrot.slane %v203_v23, 2 }
  0x3e   : > { %v205_v27 = vadd.f32 %v204_v25, %v203_v23 }
  0x40   : > { %v206_v29 = vrot.slane %v205_v27, 1 }
  0x42   : > { %v207_v31 = vadd.f32 %v206_v29, %v205_v27 }
  0x44   : > { %410 = vlog2.f32 %v207_v31 }
  0x4e   : > { %v411_v38 = vpop.eup %410 }
  0x4f   : > { %v209_v39 = vmul.f32 0.6931472, %v411_v38 }
  0x51   : > { %v225_v41 = vsub.f32 %v224_v37, %v209_v39  ;;  %v233_v42 = vmul.f32 3.0, %v209_v39 }
  0x53   : > { %v234_v43 = vsub.f32 %v232_v40, %v233_v42  ;;  %v236_v44 = vmul.f32 0.8, %v225_v41 }
  0x55   : > { %v235_v45 = vmul.f32 0.06666667, %v234_v43 }
  0x57   : > { %v237_v46 = vadd.f32 %v236_v44, %v235_v45 }
  0x59   : > { %v238_v47 = vsub.f32 0.0, %v237_v46 }
  0x5b   : > { %v239_v48 = vsel %vm189_vm2, %v238_v47, 0.0 }
  0x5c   : > { %v241_v49 = vsel %vm240_vm3, %v239_v48, 0.0 }
  0x5d   : > { %242 = vadd.xlane.f32.xlu0 %v241_v49 }
  0xea   : > { %v243_v52 = vpop.xlane.xlu0 %242 }
  0xeb   : > { %v250_v53 = vadd.f32 %v249_v51, %v243_v52 }
  0xed   : > { %251 = vst [vmem:[%s172_s4] sm:$0x1] %v250_v53 }
  0xee   : > { %425 = shalt.err (!%p422_p5)
}
  0xef   : > { %s426_s24 = scalar_lea.hbm %s581_s15, 16  ;;  %s430_s27 = scalar_lea.hbm %s630_s2, 32 }
  0xf0   : > { %p427_p6 = scmp.ne.s32.totalorder %s581_s15, %s426_s24  ;;  %p431_p10 = scmp.lt.u32.totalorder %s581_s15, %s630_s2 }
  0xf1   : > { %p432_p11 = scmp.lt.u32.totalorder %s430_s27, %s426_s24  ;;  %p434_p13 = scmp.lt.u32.totalorder %s426_s24, %s581_s15 }
  0xf2   : > { %p428_p7 = pnand %p427_p6, %p549_p4 }
  0xf3   : > { %p433_p12 = por %p432_p11, %p431_p10 }
  0xf4   : > { %p429_p9 = pneg %p428_p7 }
  0xf5   : > { %p435_p0 = por %p434_p13, %p433_p12 }
  0xf7   : > { %p436_p1 = pnand %p435_p0, %p429_p9 }
  0xf9   : > { %439 = shalt.err (!%p436_p1)
}
  0xfa   : > { %352 = dma.vmem_to_hbm [thread:$0]  (%p549_p4), %s583_s6, 16, %s581_s15, %s253_s16  }
  0xfb PF: > { %p358_p2 = scmp.ge.s32.totalorder %s490_s14, 2  ;;  %s277_s30 = sand.u32 1, %s470_s9  }
  0xfc   : > { %s278_s3 = scalar_lea.sflag [#allocation3], %s277_s30 }
  0xfd   : > { %p355_p3 = pnand %p358_p2, %p556_p8 }
  0xff   : > { %465 = dma.done.wait (!%p355_p3), %s278_s3, 16  }
 0x100   : > { %467 = vsyncadd (!%p355_p3), %s278_s3, 4294967280  ;;  %s15_s14 = sadd.s32 1, %s490_s14   ;;  %s633_s9 = smov %s474_s10 }
 0x101   : > { %p12_p5 = scmp.ge.s32.totalorder %s15_s14, 4   ;;  %s634_s10 = smov %s478_s11 }
 0x102   : > { %s635_s11 = smov %s562_s22  ;;  %s636_s12 = smov %s486_s13 }
 0x103   : > { %s637_s13 = smov %s639_s17  ;;  %14 = sbr.rel (!%p12_p5) target bundleno = 4 (0x4), region = 70 }
 0x10a   :  { %282 = vsyncpa [#allocation3], 1 }
 0x10b   :  { %284 = vsyncpa [#allocation3 + $0x1], 1 }

</bundles_post_ra>
